<compile_context>
chip_gen: v7x
topology: tpu7x:2x2x1
jax: 0.10.0
libtpu: 0.0.40
codegen_flags: <defaults>
</compile_context>

<pallas_src>
import functools

import jax
import jax.numpy as jnp
from jax.experimental import pallas as pl
from jax.experimental.pallas import tpu as pltpu

NEG_SLOPE = 0.01  # nn.LeakyReLU default negative slope


def _leaky(x):
    return jnp.where(x > 0, x, NEG_SLOPE * x)


# ----------------------------------------------------------------------------
# Fused Pallas kernel: GNN stack + one-hot row gather + MLP head
# ----------------------------------------------------------------------------
def _lightgcn_kernel(uids_ref, iids_ref, L_ref, feat_ref, wg_ref, bg_ref,
                     w1_ref, b1_ref, w2_ref, b2_ref, w3_ref, b3_ref,
                     out_ref, *, num_gnn, num_layer_dims, batch, n_nodes):
    # ---- one-hot selection matrices (replaces the dynamic-slice gather) ----
    ids_u = uids_ref[...]                                         # (B, 1) int32
    ids_i = iids_ref[...]                                         # (B, 1) int32 (already +num_users)
    col = jax.lax.broadcasted_iota(jnp.int32, (batch, n_nodes), 1)
    sel_u = jnp.where(col == ids_u, 1.0, 0.0).astype(jnp.bfloat16)  # (B, N)
    sel_i = jnp.where(col == ids_i, 1.0, 0.0).astype(jnp.bfloat16)  # (B, N)

    u_parts, i_parts = [], []

    def gather(f_bf):
        # tiny MXU dots on the vextended slot; exact row selection
        # (1.0 x bf16 value, f32 accumulation) -> same values as indexing.
        u_parts.append(jnp.dot(sel_u, f_bf, preferred_element_type=jnp.float32))
        i_parts.append(jnp.dot(sel_i, f_bf, preferred_element_type=jnp.float32))

    # ---- GNN layer stack: L is DMA'd HBM->VMEM once, reused by every layer -
    L = L_ref[...]                                                # (N, N) bf16
    feat = feat_ref[...]                                          # (N, F) f32
    feat_bf = feat.astype(jnp.bfloat16)
    gather(feat_bf)                                               # layer-0 (input) features
    for li in range(num_gnn):                                     # static unroll (small, fixed)
        Lf = jnp.dot(L, feat_bf, preferred_element_type=jnp.float32)      # (N, F)
        inter = (Lf * feat).astype(jnp.bfloat16)                          # elementwise in f32
        Linter = jnp.dot(L, inter, preferred_element_type=jnp.float32)    # (N, F)
        # Two plain projections; (L + I) @ feat == Lf + feat.
        p1 = jnp.dot((Lf + feat).astype(jnp.bfloat16), wg_ref[2 * li],
                     preferred_element_type=jnp.float32)
        p2 = jnp.dot(Linter.astype(jnp.bfloat16), wg_ref[2 * li + 1],
                     preferred_element_type=jnp.float32)
        feat = p1 + p2 + bg_ref[li]                                        # bg = b1 + b2 (f32)
        if li + 1 == num_layer_dims:   # matches PyTorch: dead for layers=[16,16,16]
            feat = _leaky(feat)
        feat_bf = feat.astype(jnp.bfloat16)
        gather(feat_bf)

    # emb row b = [u_feat0 | u_feat1 | ... | i_feat0 | i_feat1 | ...]  -> (B, 2*(G+1)*F)
    emb = jnp.concatenate(u_parts + i_parts, axis=1)

    # ---- MLP head: bf16 MXU operands, f32 accumulation / bias / leaky ------
    h = jnp.dot(emb.astype(jnp.bfloat16), w1_ref[...],
                preferred_element_type=jnp.float32) + b1_ref[...]
    h = _leaky(h)
    h = jnp.dot(h.astype(jnp.bfloat16), w2_ref[...],
                preferred_element_type=jnp.float32) + b2_ref[...]
    h = _leaky(h)
    h = jnp.dot(h.astype(jnp.bfloat16), w3_ref[...],
                preferred_element_type=jnp.float32) + b3_ref[...]
    # (B, 1) output is negligible at B=4; switch to lane-dense (1, B) if B grows.
    out_ref[...] = h


_VMEM = pl.BlockSpec(memory_space=pltpu.MemorySpace.VMEM)


def _padded_vmem_bytes(shape, dtype):
    """Tile-padded ((8*32/bits) sublanes x 128 lanes) VMEM footprint of one array."""
    itemsize = jnp.dtype(dtype).itemsize
    sublane = 8 * (4 // itemsize)
    shape = tuple(int(d) for d in shape)
    if len(shape) < 2:
        shape = (1,) + shape
    lead = 1
    for d in shape[:-2]:
        lead *= d
    rows = -(-shape[-2] // sublane) * sublane
    cols = -(-shape[-1] // 128) * 128
    return lead * rows * cols * itemsize


def lightgcn_forward(params, L, uids, iids, num_users, layer_dims):
    """Full LightGCN forward (GNN stack + gather + MLP head) in one pallas_call."""
    feat0 = jnp.concatenate([params["user_emb"], params["item_emb"]], axis=0)  # (N, F) f32
    N, F = feat0.shape
    num_gnn = len(params["gnn"])

    # All GNN layers are (F -> F) for the LightGCN config used here.
    for (w1, b1, w2, b2) in params["gnn"]:
        assert w1.shape == (F, F) and w2.shape == (F, F)

    # One bf16 weight slab: [W1_0, W2_0, W1_1, W2_1, ...] -> (2G, F, F)
    wg = jnp.stack([w for (w1, b1, w2, b2) in params["gnn"]
                    for w in (w1, w2)]).astype(jnp.bfloat16)
    # Fused bias (the two projections are summed): (G, 1, F) f32
    bg = jnp.stack([(b1 + b2).reshape(1, -1) for (w1, b1, w2, b2) in params["gnn"]])

    L_bf = L.astype(jnp.bfloat16)        # halve HBM/VMEM traffic of the dominant array
    B = int(uids.shape[0])
    uids2 = uids.astype(jnp.int32).reshape(B, 1)
    iids2 = (iids.astype(jnp.int32) + num_users).reshape(B, 1)

    w1, b1 = params["fc1"]
    w2, b2 = params["fc2"]
    w3, b3 = params["fc3"]
    w1b, w2b, w3b = (w.astype(jnp.bfloat16) for w in (w1, w2, w3))
    b1 = b1.reshape(1, -1)
    b2 = b2.reshape(1, -1)
    b3 = b3.reshape(1, -1)

    operands = (uids2, iids2, L_bf, feat0, wg, bg, w1b, b1, w2b, b2, w3b, b3)
    out_shape = jax.ShapeDtypeStruct((B, w3.shape[1]), jnp.float32)

    # Tight VMEM budget: padded operand/output footprint + a few MiB headroom.
    footprint = sum(_padded_vmem_bytes(a.shape, a.dtype) for a in operands)
    footprint += _padded_vmem_bytes(out_shape.shape, out_shape.dtype)
    vmem_limit = int(2 * footprint + (8 << 20))

    kernel = functools.partial(_lightgcn_kernel,
                               num_gnn=num_gnn,
                               num_layer_dims=len(layer_dims),
                               batch=B, n_nodes=N)
    out = pl.pallas_call(
        kernel,
        out_shape=out_shape,
        in_specs=[_VMEM] * len(operands),
        out_specs=_VMEM,
        compiler_params=pltpu.CompilerParams(vmem_limit_bytes=vmem_limit),
    )(*operands)
    return out.reshape(-1)  # .flatten()


# ----------------------------------------------------------------------------
# Parameter / graph construction (deterministic, synthetic)
# ----------------------------------------------------------------------------
def kaiming_normal(key, shape):
    fan_in = shape[1]
    std = jnp.sqrt(2.0 / fan_in)  # nonlinearity='relu' -> gain sqrt(2)
    return std * jax.random.normal(key, shape, dtype=jnp.float32)


def linear_params(key, in_f, out_f):
    kw, kb = jax.random.split(key)
    bound = 1.0 / jnp.sqrt(in_f)
    w = jax.random.uniform(kw, (in_f, out_f), jnp.float32, -bound, bound)
    b = jax.random.uniform(kb, (out_f,), jnp.float32, -bound, bound)
    return w, b


def build_laplacian(key, num_users, num_items):
    """Dense symmetric-normalized bipartite adjacency: L = D^-1/2 A D^-1/2.

    (The PyTorch module builds this from a sparse rating table via scipy;
    here it is densified with deterministic synthetic ratings.)
    """
    N = num_users + num_items
    k1, k2 = jax.random.split(key)
    mask = (jax.random.uniform(k1, (num_users, num_items)) < 0.3).astype(jnp.float32)
    eye_like = jnp.zeros((num_users, num_items)).at[
        jnp.arange(num_users), jnp.arange(num_users) % num_items
    ].set(1.0)
    mask = jnp.maximum(mask, eye_like)
    stars = jnp.round(jax.random.uniform(k2, (num_users, num_items), minval=1.0, maxval=5.0))
    R = mask * stars
    A = jnp.zeros((N, N), dtype=jnp.float32)
    A = A.at[:num_users, num_users:].set(R)
    A = A.at[num_users:, :num_users].set(R.T)
    deg = jnp.sum((A > 0).astype(jnp.float32), axis=1)
    d_inv_sqrt = jnp.where(deg > 0, deg ** -0.5, 0.0)
    return d_inv_sqrt[:, None] * A * d_inv_sqrt[None, :]


# ----------------------------------------------------------------------------
# Pure-JAX reference (mirrors the kernel math, incl. bf16 MXU operands)
# ----------------------------------------------------------------------------
def lightgcn_reference(params, L, uids, iids, num_users, layer_dims):
    L_bf = L.astype(jnp.bfloat16)
    feat = jnp.concatenate([params["user_emb"], params["item_emb"]], axis=0)
    feats = [feat]
    for li, (w1, b1, w2, b2) in enumerate(params["gnn"]):
        feat_bf = feat.astype(jnp.bfloat16)
        Lf = jnp.dot(L_bf, feat_bf, preferred_element_type=jnp.float32)
        inter = (Lf * feat).astype(jnp.bfloat16)
        Linter = jnp.dot(L_bf, inter, preferred_element_type=jnp.float32)
        p1 = jnp.dot((Lf + feat).astype(jnp.bfloat16), w1.astype(jnp.bfloat16),
                     preferred_element_type=jnp.float32)
        p2 = jnp.dot(Linter.astype(jnp.bfloat16), w2.astype(jnp.bfloat16),
                     preferred_element_type=jnp.float32)
        feat = p1 + p2 + (b1 + b2)
        if li + 1 == len(layer_dims):
            feat = _leaky(feat)
        feats.append(feat)
    final = jnp.concatenate(feats, axis=1)
    emb = jnp.concatenate([final[uids], final[iids + num_users]], axis=1)
    w1, b1 = params["fc1"]
    w2, b2 = params["fc2"]
    w3, b3 = params["fc3"]
    h = _leaky(jnp.dot(emb.astype(jnp.bfloat16), w1.astype(jnp.bfloat16),
                       preferred_element_type=jnp.float32) + b1)
    h = _leaky(jnp.dot(h.astype(jnp.bfloat16), w2.astype(jnp.bfloat16),
                       preferred_element_type=jnp.float32) + b2)
    h = jnp.dot(h.astype(jnp.bfloat16), w3.astype(jnp.bfloat16),
                preferred_element_type=jnp.float32) + b3
    return h.reshape(-1)


# ----------------------------------------------------------------------------
if __name__ == "__main__":
    num_users, num_items = 24, 24
    latent_dim = 16
    layers = [16, 16, 16]  # -> 2 GNNLayers, final_emb dim = 16 * 3 = 48
    batch = 4

    key = jax.random.PRNGKey(0)
    keys = jax.random.split(key, 12)

    params = {
        "user_emb": kaiming_normal(keys[0], (num_users, latent_dim)),
        "item_emb": kaiming_normal(keys[1], (num_items, latent_dim)),
        "gnn": [],
        "fc1": linear_params(keys[5], layers[-1] * len(layers) * 2, 64),
        "fc2": linear_params(keys[6], 64, 32),
        "fc3": linear_params(keys[7], 32, 1),
    }
    for li, (f, t) in enumerate(zip(layers[:-1], layers[1:])):
        kw1, kw2 = jax.random.split(keys[2 + li])
        w1, b1 = linear_params(kw1, f, t)
        w2, b2 = linear_params(kw2, f, t)
        params["gnn"].append((w1, b1, w2, b2))

    L = build_laplacian(keys[8], num_users, num_items)

    uids = jnp.array([0, 3, 7, 11], dtype=jnp.int32)
    iids = jnp.array([2, 5, 9, 20], dtype=jnp.int32)

    out = lightgcn_forward(params, L, uids, iids, num_users, layers)
    out = jax.block_until_ready(out)

    ref = lightgcn_reference(params, L, uids, iids, num_users, layers)
    assert out.shape == (batch,)
    assert jnp.allclose(out, ref, atol=1e-3, rtol=1e-3), (out, ref)

    print("KERNEL_OK")
</pallas_src>

<mosaic_0001>
module attributes {stable_mosaic.version = 11 : i64} {
  func.func @_lightgcn_kernel(%arg0: memref<4x1xi32, #tpu.memory_space<vmem>>, %arg1: memref<4x1xi32, #tpu.memory_space<vmem>>, %arg2: memref<48x48xbf16, #tpu.memory_space<vmem>>, %arg3: memref<48x16xf32, #tpu.memory_space<vmem>>, %arg4: memref<4x16x16xbf16, #tpu.memory_space<vmem>>, %arg5: memref<2x1x16xf32, #tpu.memory_space<vmem>>, %arg6: memref<96x64xbf16, #tpu.memory_space<vmem>>, %arg7: memref<1x64xf32, #tpu.memory_space<vmem>>, %arg8: memref<64x32xbf16, #tpu.memory_space<vmem>>, %arg9: memref<1x32xf32, #tpu.memory_space<vmem>>, %arg10: memref<32x1xbf16, #tpu.memory_space<vmem>>, %arg11: memref<1x1xf32, #tpu.memory_space<vmem>>, %arg12: memref<4x1xf32, #tpu.memory_space<vmem>>) attributes {dimension_semantics = [], scalar_prefetch = 0 : i64, scratch_operands = 0 : i64, tpu.core_type = #tpu.core_type<tc>} {
    %c0 = arith.constant 0 : index
    %c0_0 = arith.constant 0 : index
    %0 = vector.load %arg0[%c0, %c0_0] : memref<4x1xi32, #tpu.memory_space<vmem>>, vector<4x1xi32>
    %c0_1 = arith.constant 0 : index
    %c0_2 = arith.constant 0 : index
    %1 = vector.load %arg1[%c0_1, %c0_2] : memref<4x1xi32, #tpu.memory_space<vmem>>, vector<4x1xi32>
    %2 = tpu.iota {dimensions = array<i32: 1>} : vector<4x48xi32>
    %3 = vector.broadcast %0 : vector<4x1xi32> to vector<4x48xi32>
    %4 = arith.cmpi eq, %2, %3 : vector<4x48xi32>
    %cst = arith.constant 1.000000e+00 : f32
    %cst_3 = arith.constant 0.000000e+00 : f32
    %5 = vector.broadcast %cst : f32 to vector<4x48xf32>
    %6 = vector.broadcast %cst_3 : f32 to vector<4x48xf32>
    %7 = arith.select %4, %5, %6 : vector<4x48xi1>, vector<4x48xf32>
    %8 = arith.truncf %7 : vector<4x48xf32> to vector<4x48xbf16>
    %9 = vector.broadcast %1 : vector<4x1xi32> to vector<4x48xi32>
    %10 = arith.cmpi eq, %2, %9 : vector<4x48xi32>
    %cst_4 = arith.constant 1.000000e+00 : f32
    %cst_5 = arith.constant 0.000000e+00 : f32
    %11 = vector.broadcast %cst_4 : f32 to vector<4x48xf32>
    %12 = vector.broadcast %cst_5 : f32 to vector<4x48xf32>
    %13 = arith.select %10, %11, %12 : vector<4x48xi1>, vector<4x48xf32>
    %14 = arith.truncf %13 : vector<4x48xf32> to vector<4x48xbf16>
    %c0_6 = arith.constant 0 : index
    %c0_7 = arith.constant 0 : index
    %15 = vector.load %arg2[%c0_6, %c0_7] : memref<48x48xbf16, #tpu.memory_space<vmem>>, vector<48x48xbf16>
    %c0_8 = arith.constant 0 : index
    %c0_9 = arith.constant 0 : index
    %16 = vector.load %arg3[%c0_8, %c0_9] : memref<48x16xf32, #tpu.memory_space<vmem>>, vector<48x16xf32>
    %17 = arith.truncf %16 : vector<48x16xf32> to vector<48x16xbf16>
    %cst_10 = arith.constant dense<0.000000e+00> : vector<4x16xf32>
    %18 = tpu.matmul %8, %17, %cst_10 {dimension_numbers = #tpu.dot_dimension_numbers<[1], [0], [0], [1], [0, 0, 1, 1], [], []>} : vector<4x48xbf16>, vector<48x16xbf16>, vector<4x16xf32> -> vector<4x16xf32>
    %cst_11 = arith.constant dense<0.000000e+00> : vector<4x16xf32>
    %19 = tpu.matmul %14, %17, %cst_11 {dimension_numbers = #tpu.dot_dimension_numbers<[1], [0], [0], [1], [0, 0, 1, 1], [], []>} : vector<4x48xbf16>, vector<48x16xbf16>, vector<4x16xf32> -> vector<4x16xf32>
    %cst_12 = arith.constant dense<0.000000e+00> : vector<48x16xf32>
    %20 = tpu.matmul %15, %17, %cst_12 {dimension_numbers = #tpu.dot_dimension_numbers<[1], [0], [0], [1], [0, 0, 1, 1], [], []>} : vector<48x48xbf16>, vector<48x16xbf16>, vector<48x16xf32> -> vector<48x16xf32>
    %21 = arith.mulf %20, %16 : vector<48x16xf32>
    %22 = arith.truncf %21 : vector<48x16xf32> to vector<48x16xbf16>
    %cst_13 = arith.constant dense<0.000000e+00> : vector<48x16xf32>
    %23 = tpu.matmul %15, %22, %cst_13 {dimension_numbers = #tpu.dot_dimension_numbers<[1], [0], [0], [1], [0, 0, 1, 1], [], []>} : vector<48x48xbf16>, vector<48x16xbf16>, vector<48x16xf32> -> vector<48x16xf32>
    %24 = arith.addf %20, %16 : vector<48x16xf32>
    %25 = arith.truncf %24 : vector<48x16xf32> to vector<48x16xbf16>
    %c0_14 = arith.constant 0 : index
    %c0_15 = arith.constant 0 : index
    %c0_16 = arith.constant 0 : index
    %26 = vector.load %arg4[%c0_14, %c0_15, %c0_16] : memref<4x16x16xbf16, #tpu.memory_space<vmem>>, vector<1x16x16xbf16>
    %27 = vector.shape_cast %26 : vector<1x16x16xbf16> to vector<16x16xbf16>
    %cst_17 = arith.constant dense<0.000000e+00> : vector<48x16xf32>
    %28 = tpu.matmul %25, %27, %cst_17 {dimension_numbers = #tpu.dot_dimension_numbers<[1], [0], [0], [1], [0, 0, 1, 1], [], []>} : vector<48x16xbf16>, vector<16x16xbf16>, vector<48x16xf32> -> vector<48x16xf32>
    %29 = arith.truncf %23 : vector<48x16xf32> to vector<48x16xbf16>
    %c1 = arith.constant 1 : index
    %c0_18 = arith.constant 0 : index
    %c0_19 = arith.constant 0 : index
    %30 = vector.load %arg4[%c1, %c0_18, %c0_19] : memref<4x16x16xbf16, #tpu.memory_space<vmem>>, vector<1x16x16xbf16>
    %31 = vector.shape_cast %30 : vector<1x16x16xbf16> to vector<16x16xbf16>
    %cst_20 = arith.constant dense<0.000000e+00> : vector<48x16xf32>
    %32 = tpu.matmul %29, %31, %cst_20 {dimension_numbers = #tpu.dot_dimension_numbers<[1], [0], [0], [1], [0, 0, 1, 1], [], []>} : vector<48x16xbf16>, vector<16x16xbf16>, vector<48x16xf32> -> vector<48x16xf32>
    %33 = arith.addf %28, %32 : vector<48x16xf32>
    %c0_21 = arith.constant 0 : index
    %c0_22 = arith.constant 0 : index
    %c0_23 = arith.constant 0 : index
    %34 = vector.load %arg5[%c0_21, %c0_22, %c0_23] : memref<2x1x16xf32, #tpu.memory_space<vmem>>, vector<1x1x16xf32>
    %35 = vector.shape_cast %34 : vector<1x1x16xf32> to vector<1x16xf32>
    %36 = vector.broadcast %35 : vector<1x16xf32> to vector<48x16xf32>
    %37 = arith.addf %33, %36 : vector<48x16xf32>
    %38 = arith.truncf %37 : vector<48x16xf32> to vector<48x16xbf16>
    %cst_24 = arith.constant dense<0.000000e+00> : vector<4x16xf32>
    %39 = tpu.matmul %8, %38, %cst_24 {dimension_numbers = #tpu.dot_dimension_numbers<[1], [0], [0], [1], [0, 0, 1, 1], [], []>} : vector<4x48xbf16>, vector<48x16xbf16>, vector<4x16xf32> -> vector<4x16xf32>
    %cst_25 = arith.constant dense<0.000000e+00> : vector<4x16xf32>
    %40 = tpu.matmul %14, %38, %cst_25 {dimension_numbers = #tpu.dot_dimension_numbers<[1], [0], [0], [1], [0, 0, 1, 1], [], []>} : vector<4x48xbf16>, vector<48x16xbf16>, vector<4x16xf32> -> vector<4x16xf32>
    %cst_26 = arith.constant dense<0.000000e+00> : vector<48x16xf32>
    %41 = tpu.matmul %15, %38, %cst_26 {dimension_numbers = #tpu.dot_dimension_numbers<[1], [0], [0], [1], [0, 0, 1, 1], [], []>} : vector<48x48xbf16>, vector<48x16xbf16>, vector<48x16xf32> -> vector<48x16xf32>
    %42 = arith.mulf %41, %37 : vector<48x16xf32>
    %43 = arith.truncf %42 : vector<48x16xf32> to vector<48x16xbf16>
    %cst_27 = arith.constant dense<0.000000e+00> : vector<48x16xf32>
    %44 = tpu.matmul %15, %43, %cst_27 {dimension_numbers = #tpu.dot_dimension_numbers<[1], [0], [0], [1], [0, 0, 1, 1], [], []>} : vector<48x48xbf16>, vector<48x16xbf16>, vector<48x16xf32> -> vector<48x16xf32>
    %45 = arith.addf %41, %37 : vector<48x16xf32>
    %46 = arith.truncf %45 : vector<48x16xf32> to vector<48x16xbf16>
    %c2 = arith.constant 2 : index
    %c0_28 = arith.constant 0 : index
    %c0_29 = arith.constant 0 : index
    %47 = vector.load %arg4[%c2, %c0_28, %c0_29] : memref<4x16x16xbf16, #tpu.memory_space<vmem>>, vector<1x16x16xbf16>
    %48 = vector.shape_cast %47 : vector<1x16x16xbf16> to vector<16x16xbf16>
    %cst_30 = arith.constant dense<0.000000e+00> : vector<48x16xf32>
    %49 = tpu.matmul %46, %48, %cst_30 {dimension_numbers = #tpu.dot_dimension_numbers<[1], [0], [0], [1], [0, 0, 1, 1], [], []>} : vector<48x16xbf16>, vector<16x16xbf16>, vector<48x16xf32> -> vector<48x16xf32>
    %50 = arith.truncf %44 : vector<48x16xf32> to vector<48x16xbf16>
    %c3 = arith.constant 3 : index
    %c0_31 = arith.constant 0 : index
    %c0_32 = arith.constant 0 : index
    %51 = vector.load %arg4[%c3, %c0_31, %c0_32] : memref<4x16x16xbf16, #tpu.memory_space<vmem>>, vector<1x16x16xbf16>
    %52 = vector.shape_cast %51 : vector<1x16x16xbf16> to vector<16x16xbf16>
    %cst_33 = arith.constant dense<0.000000e+00> : vector<48x16xf32>
    %53 = tpu.matmul %50, %52, %cst_33 {dimension_numbers = #tpu.dot_dimension_numbers<[1], [0], [0], [1], [0, 0, 1, 1], [], []>} : vector<48x16xbf16>, vector<16x16xbf16>, vector<48x16xf32> -> vector<48x16xf32>
    %54 = arith.addf %49, %53 : vector<48x16xf32>
    %c1_34 = arith.constant 1 : index
    %c0_35 = arith.constant 0 : index
    %c0_36 = arith.constant 0 : index
    %55 = vector.load %arg5[%c1_34, %c0_35, %c0_36] : memref<2x1x16xf32, #tpu.memory_space<vmem>>, vector<1x1x16xf32>
    %56 = vector.shape_cast %55 : vector<1x1x16xf32> to vector<1x16xf32>
    %57 = vector.broadcast %56 : vector<1x16xf32> to vector<48x16xf32>
    %58 = arith.addf %54, %57 : vector<48x16xf32>
    %59 = arith.truncf %58 : vector<48x16xf32> to vector<48x16xbf16>
    %cst_37 = arith.constant dense<0.000000e+00> : vector<4x16xf32>
    %60 = tpu.matmul %8, %59, %cst_37 {dimension_numbers = #tpu.dot_dimension_numbers<[1], [0], [0], [1], [0, 0, 1, 1], [], []>} : vector<4x48xbf16>, vector<48x16xbf16>, vector<4x16xf32> -> vector<4x16xf32>
    %cst_38 = arith.constant dense<0.000000e+00> : vector<4x16xf32>
    %61 = tpu.matmul %14, %59, %cst_38 {dimension_numbers = #tpu.dot_dimension_numbers<[1], [0], [0], [1], [0, 0, 1, 1], [], []>} : vector<4x48xbf16>, vector<48x16xbf16>, vector<4x16xf32> -> vector<4x16xf32>
    %62 = tpu.concatenate %18, %39, %60, %19, %40, %61 in 1 : vector<4x16xf32>, vector<4x16xf32>, vector<4x16xf32>, vector<4x16xf32>, vector<4x16xf32>, vector<4x16xf32> -> vector<4x96xf32>
    %63 = arith.truncf %62 : vector<4x96xf32> to vector<4x96xbf16>
    %c0_39 = arith.constant 0 : index
    %c0_40 = arith.constant 0 : index
    %64 = vector.load %arg6[%c0_39, %c0_40] : memref<96x64xbf16, #tpu.memory_space<vmem>>, vector<96x64xbf16>
    %cst_41 = arith.constant dense<0.000000e+00> : vector<4x64xf32>
    %65 = tpu.matmul %63, %64, %cst_41 {dimension_numbers = #tpu.dot_dimension_numbers<[1], [0], [0], [1], [0, 0, 1, 1], [], []>} : vector<4x96xbf16>, vector<96x64xbf16>, vector<4x64xf32> -> vector<4x64xf32>
    %c0_42 = arith.constant 0 : index
    %c0_43 = arith.constant 0 : index
    %66 = vector.load %arg7[%c0_42, %c0_43] : memref<1x64xf32, #tpu.memory_space<vmem>>, vector<1x64xf32>
    %67 = vector.broadcast %66 : vector<1x64xf32> to vector<4x64xf32>
    %68 = arith.addf %65, %67 : vector<4x64xf32>
    %cst_44 = arith.constant 0.000000e+00 : f32
    %69 = vector.broadcast %cst_44 : f32 to vector<4x64xf32>
    %70 = arith.cmpf ogt, %68, %69 : vector<4x64xf32>
    %cst_45 = arith.constant 0.00999999977 : f32
    %71 = vector.broadcast %cst_45 : f32 to vector<4x64xf32>
    %72 = arith.mulf %71, %68 : vector<4x64xf32>
    %73 = arith.select %70, %68, %72 : vector<4x64xi1>, vector<4x64xf32>
    %74 = arith.truncf %73 : vector<4x64xf32> to vector<4x64xbf16>
    %c0_46 = arith.constant 0 : index
    %c0_47 = arith.constant 0 : index
    %75 = vector.load %arg8[%c0_46, %c0_47] : memref<64x32xbf16, #tpu.memory_space<vmem>>, vector<64x32xbf16>
    %cst_48 = arith.constant dense<0.000000e+00> : vector<4x32xf32>
    %76 = tpu.matmul %74, %75, %cst_48 {dimension_numbers = #tpu.dot_dimension_numbers<[1], [0], [0], [1], [0, 0, 1, 1], [], []>} : vector<4x64xbf16>, vector<64x32xbf16>, vector<4x32xf32> -> vector<4x32xf32>
    %c0_49 = arith.constant 0 : index
    %c0_50 = arith.constant 0 : index
    %77 = vector.load %arg9[%c0_49, %c0_50] : memref<1x32xf32, #tpu.memory_space<vmem>>, vector<1x32xf32>
    %78 = vector.broadcast %77 : vector<1x32xf32> to vector<4x32xf32>
    %79 = arith.addf %76, %78 : vector<4x32xf32>
    %cst_51 = arith.constant 0.000000e+00 : f32
    %80 = vector.broadcast %cst_51 : f32 to vector<4x32xf32>
    %81 = arith.cmpf ogt, %79, %80 : vector<4x32xf32>
    %cst_52 = arith.constant 0.00999999977 : f32
    %82 = vector.broadcast %cst_52 : f32 to vector<4x32xf32>
    %83 = arith.mulf %82, %79 : vector<4x32xf32>
    %84 = arith.select %81, %79, %83 : vector<4x32xi1>, vector<4x32xf32>
    %85 = arith.truncf %84 : vector<4x32xf32> to vector<4x32xbf16>
    %c0_53 = arith.constant 0 : index
    %c0_54 = arith.constant 0 : index
    %86 = vector.load %arg10[%c0_53, %c0_54] : memref<32x1xbf16, #tpu.memory_space<vmem>>, vector<32x1xbf16>
    %cst_55 = arith.constant dense<0.000000e+00> : vector<4x1xf32>
    %87 = tpu.matmul %85, %86, %cst_55 {dimension_numbers = #tpu.dot_dimension_numbers<[1], [0], [0], [1], [0, 0, 1, 1], [], []>} : vector<4x32xbf16>, vector<32x1xbf16>, vector<4x1xf32> -> vector<4x1xf32>
    %c0_56 = arith.constant 0 : index
    %c0_57 = arith.constant 0 : index
    %88 = vector.load %arg11[%c0_56, %c0_57] : memref<1x1xf32, #tpu.memory_space<vmem>>, vector<1x1xf32>
    %89 = vector.broadcast %88 : vector<1x1xf32> to vector<4x1xf32>
    %90 = arith.addf %87, %89 : vector<4x1xf32>
    %c0_58 = arith.constant 0 : index
    %c0_59 = arith.constant 0 : index
    %91 = vector.load %arg12[%c0_58, %c0_59] : memref<4x1xf32, #tpu.memory_space<vmem>>, vector<4x1xf32>
    tpu.vector_store %arg12[%c0_58, %c0_59], %90 {strides = array<i32>} : memref<4x1xf32, #tpu.memory_space<vmem>>, vector<4x1xf32>,
    return
  }
}

</mosaic_0001>

<bundles_post_ra>
// kernel: tpu_custom_call.1
= control target key start
LH: loop header
LB: loop body
LE: loop exit
PB: predicated region body
PF: predicated region fallthrough
CT: control target
= control target key end

     0   :  { %v1634_v0 = vmov 0   ;;  %v1635_v2 = vmov 0.0   ;;  %vm1636_vm0 = vmmov 0   ;;  %v46_v13 = vlaneseq  ;;  %s1638_s29 = smov 16   ;;  %s1639_s27 = smov 32   ;;  %s2050_s0 = inlined_call_operand.vmem [shape: s32[4,1], index: 0, kind: input, shape index: {}]   ;;  %s2051_s1 = inlined_call_operand.vmem [shape: s32[4,1], index: 1, kind: input, shape index: {}]   ;;  %s2052_s3 = inlined_call_operand.vmem [shape: f32[48,16], index: 3, kind: input, shape index: {}]   ;;  %s2053_s2 = inlined_call_operand.vmem [shape: bf16[48,48], index: 2, kind: input, shape index: {}]   ;;  %s2054_s4 = inlined_call_operand.vmem [shape: bf16[4,16,16], index: 4, kind: input, shape index: {}]   ;;  %s2055_s5 = inlined_call_operand.vmem [shape: f32[2,1,16], index: 5, kind: input, shape index: {}]   ;;  %s2056_s6 = inlined_call_operand.vmem [shape: bf16[96,64], index: 6, kind: input, shape index: {}]   ;;  %s2057_s8 = inlined_call_operand.vmem [shape: bf16[64,32], index: 8, kind: input, shape index: {}]   ;;  %s2058_s7 = inlined_call_operand.vmem [shape: f32[1,64], index: 7, kind: input, shape index: {}]   ;;  %s2059_s10 = inlined_call_operand.vmem [shape: bf16[32,1], index: 10, kind: input, shape index: {}]   ;;  %s2060_s11 = inlined_call_operand.<no memory space> [shape: f32[1,1], index: 11, kind: input, shape index: {}]   ;;  %s2061_s9 = inlined_call_operand.vmem [shape: f32[1,32], index: 9, kind: input, shape index: {}]   ;;  %s2062_s12 = inlined_call_operand.vmem [shape: f32[4,1], index: 12, kind: output, shape index: {}]  }
   0x1   :  { %1614 = vset.pattern.permute.xlu0 %v1634_v0  ;;  %v44_v1 = vld [vmem:[%s2050_s0] sm:$0xf]  ;;  %1382 = vmatprep.subr.bf16.mxu0 %v1635_v2  ;;  %v1719_v4 = vld [vmem:[%s2052_s3 + $0x8] sm:$0xff]  ;;  %v1724_v5 = vld [vmem:[%s2052_s3 + $0x10] sm:$0xff]  ;;  %vm75_vm2 = vcmask 392192   ;;  %vm332_vm4 = vcmask 130048  }
   0x2   :  { %v1714_v3 = vld [vmem:[%s2052_s3] sm:$0xff]  ;;  %49 = vperm.xlu0 %1614, %v44_v1   ;;  %v1729_v6 = vld [vmem:[%s2052_s3 + $0x18] sm:$0xff]  ;;  %1392 = vmatprep.subr.bf16.mxu1 %v1635_v2  ;;  %v1748_v11 = vld [vmem:[%s2052_s3 + $0x28] sm:$0xff]  ;;  %v47_v14 = vand.u32 127, %v46_v13  ;;  %s1640_s28 = smov 80   ;;  %vm970_vm5 = vcmask 261120  }
   0x3   :  { %v45_v7 = vld [vmem:[%s2051_s1] sm:$0xf]  ;;  %v72_v8 = vpack.c.bf16 %v1719_v4, %v1714_v3  ;;  %v73_v9 = vpack.c.bf16 %v1729_v6, %v1724_v5  ;;  %1388 = vmatprep.mubr.msk.bf16.mxu0 %vm1636_vm0, %v1635_v2  ;;  %1398 = vmatprep.mubr.msk.bf16.mxu1 %vm1636_vm0, %v1635_v2  ;;  %v1790_v22 = vld [vmem:[%s2053_s2 + $0x8] sm:$0xff]   ;;  %v1799_v23 = vld [vmem:[%s2053_s2 + $0x10] sm:$0xff]   ;;  %vm973_vm6 = vcmask 523264   ;;  %vm975_vm7 = vcmask 654336  }
   0x4   :  { %v1743_v10 = vld [vmem:[%s2052_s3 + $0x20] sm:$0xff]  ;;  %v1619_v24 = vld [vmem:[%s2054_s4 + $0x8] sm:$0xff]   ;;  %vm1033_vm8 = vcmask 785408   ;;  %vm1233_vm11 = vcmask 3072  }
   0x5   :  { %1383 = vmatpush3.bf16.msra.mxu0 %v72_v8  ;;  %1393 = vmatpush3.bf16.msra.mxu1 %v72_v8  ;;  %v74_v12 = vpack.c.bf16 %v1748_v11, %v1743_v10  ;;  %v1780_v21 = vld [vmem:[%s2053_s2] sm:$0xff]   ;;  %s1637_s2 = smov 48  }
   0x6   :  { %55 = vperm.xlu0 %1614, %v45_v7   ;;  %1384 = vmatprep.subr.bf16.mxu0 %v1635_v2  ;;  %v1618_v63 = vld [vmem:[%s2054_s4] sm:$0xff]  }
   0x7   :  { %1394 = vmatprep.subr.bf16.mxu1 %v1635_v2 }
   0x9   :  { %1385 = vmatpush3.bf16.msra.mxu0 %v73_v9  ;;  %1395 = vmatpush3.bf16.msra.mxu1 %v73_v9 }
   0xa   :  { %1386 = vmatprep.subr.bf16.mxu0 %v1635_v2  ;;  %1396 = vmatprep.subr.bf16.mxu1 %v1635_v2 }
   0xd   :  { %1387 = vmatpush3.bf16.msra.mxu0 %v74_v12  ;;  %1397 = vmatpush3.bf16.msra.mxu1 %v74_v12 }
   0xe   :  { %1402 = vmatprep.subr.bf16.mxu0 %v1635_v2  ;;  %1420 = vmatprep.subr.bf16.mxu1 %v1635_v2 }
  0x81   :  { %v50_v15 = vpop.permute.xlu0 %49 }
  0x82   :  { %vm51_vm1 = vcmp.eq.s32.totalorder %v47_v14, %v50_v15 }
  0x83   :  { %v52_v16 = vsel %vm51_vm1, 1.0, %v1635_v2 }
  0x84   :  { %v1762_v17 = vpack.c.bf16 %v52_v16, %v52_v16 }
  0x85   :  { %v56_v18 = vpop.permute.xlu0 %55 }
  0x86   :  { %vm57_vm3 = vcmp.eq.s32.totalorder %v47_v14, %v56_v18  ;;  %1389 = vmatmul.mubr.msk.bf16.vlgmr.msra.gmra.mrb[0].mxu0 %vm75_vm2, %v1762_v17 }
  0x87   :  { %v58_v19 = vsel %vm57_vm3, 1.0, %v1635_v2  ;;  %1403 = vmatpush3.bf16.msra.mxu0 %v72_v8  ;;  %1408 = vmatprep.mubr.msk.bf16.mxu0 %vm1636_vm0, %v1635_v2 }
  0x88   :  { %v1769_v20 = vpack.c.bf16 %v58_v19, %v58_v19  ;;  %1404 = vmatprep.subr.bf16.mxu0 %v1635_v2 }
  0x8a   :  { %1399 = vmatmul.mubr.msk.bf16.vlgmr.msra.gmra.mrb[0].mxu1 %vm75_vm2, %v1769_v20 }
  0x8b   :  { %1405 = vmatpush3.bf16.msra.mxu0 %v73_v9  ;;  %1426 = vmatprep.mubr.msk.bf16.mxu1 %vm1636_vm0, %v1635_v2 }
  0x8c   :  { %1406 = vmatprep.subr.bf16.mxu0 %v1635_v2 }
  0x8f   :  { %1407 = vmatpush3.bf16.msra.mxu0 %v74_v12 }
  0x90   :  { %1438 = vmatprep.subr.bf16.mxu0 %v1635_v2 }
  0x92   :  { %1409 = vmatmul.mubr.msk.bf16.vlgmr.msra.gmra.mrb[4].mxu0 %vm75_vm2, %v1780_v21 }
  0x93   :  { %1412 = vmatprep.mubr.msk.bf16.mxu0 %vm1636_vm0, %v1635_v2  ;;  %1439 = vmatpush3.bf16.msra.mxu0 %v1619_v24 }
  0x94   :  { %1466 = vmatprep.subr.bf16.mxu0 %v1635_v2 }
  0x9a   :  { %1413 = vmatmul.mubr.msk.bf16.gmra.mrb[8].mxu0 %vm75_vm2, %v1790_v22 }
  0x9b   :  { %1416 = vmatprep.mubr.msk.bf16.mxu0 %vm1636_vm0, %v1635_v2 }
  0xa2   :  { %1417 = vmatmul.mubr.msk.bf16.gmra.mrb[12].mxu0 %vm75_vm2, %v1799_v23 }
  0xa3   :  { %1440 = vmatprep.mubr.msk.bf16.mxu0 %vm1636_vm0, %v1635_v2 }
 0x159   :  { %v1809_v25 = vpop.f32.mrb[0].mxu0 }
 0x15a   :  { %v1390_v26 = vpop.f32.mrb[1].mxu0 }
 0x15b   :  { %v116_v27 = vpop.f32.mrb[2].mxu0 }
 0x15c   :  { %v1391_v28 = vpop.f32.mrb[3].mxu0 }
 0x15d   :  { %v156_v29 = vpop.f32.mrb[0].mxu1 }
 0x15e   :  { %958 = vrot.lane.b32.xlu0 %v156_v29, %s1637_s2  ;;  %v1400_v30 = vpop.f32.mrb[1].mxu1 }
 0x15f   :  { %v159_v31 = vpop.f32.mrb[2].mxu1 }
 0x160   :  { %v1401_v32 = vpop.f32.mrb[3].mxu1 }
 0x165   :  { %v220_v33 = vpop.f32.mrb[4].mxu0 }
 0x166   :  { %v1410_v34 = vpop.f32.mrb[5].mxu0  ;;  %v243_v36 = vmul.f32 %v220_v33, %v1714_v3  ;;  %v309_v37 = vadd.f32 %v220_v33, %v1714_v3 }
 0x167   :  { %v223_v35 = vpop.f32.mrb[6].mxu0 }
 0x168   :  { %v244_v38 = vmul.f32 %v223_v35, %v1719_v4  ;;  %v310_v39 = vadd.f32 %v223_v35, %v1719_v4  ;;  %v1411_v40 = vpop.f32.mrb[7].mxu0 }
 0x16a   :  { %v249_v41 = vpack.c.bf16 %v244_v38, %v243_v36  ;;  %v315_v42 = vpack.c.bf16 %v310_v39, %v309_v37  ;;  %v1260_v37 = vld [vmem:[%s2055_s5] ss:$0 sm:$0xff] }
 0x16c   :  { %1421 = vmatpush3.bf16.msra.mxu1 %v249_v41 }
 0x16d   :  { %v228_v43 = vpop.f32.mrb[8].mxu0  ;;  %1422 = vmatprep.subr.bf16.mxu1 %v1635_v2 }
 0x16e   :  { %v1414_v44 = vpop.f32.mrb[9].mxu0  ;;  %v245_v46 = vmul.f32 %v228_v43, %v1724_v5  ;;  %v311_v47 = vadd.f32 %v228_v43, %v1724_v5 }
 0x16f   :  { %v231_v45 = vpop.f32.mrb[10].mxu0 }
 0x170   :  { %v246_v48 = vmul.f32 %v231_v45, %v1729_v6  ;;  %v312_v49 = vadd.f32 %v231_v45, %v1729_v6  ;;  %v1415_v50 = vpop.f32.mrb[11].mxu0 }
 0x172   :  { %v250_v51 = vpack.c.bf16 %v246_v48, %v245_v46  ;;  %v316_v52 = vpack.c.bf16 %v312_v49, %v311_v47 }
 0x174   :  { %1423 = vmatpush3.bf16.msra.mxu1 %v250_v51 }
 0x175   :  { %v236_v53 = vpop.f32.mrb[12].mxu0  ;;  %1424 = vmatprep.subr.bf16.mxu1 %v1635_v2 }
 0x176   :  { %v1418_v54 = vpop.f32.mrb[13].mxu0  ;;  %v247_v56 = vmul.f32 %v236_v53, %v1743_v10  ;;  %v313_v57 = vadd.f32 %v236_v53, %v1743_v10 }
 0x177   :  { %v239_v55 = vpop.f32.mrb[14].mxu0 }
 0x178   :  { %v248_v58 = vmul.f32 %v239_v55, %v1748_v11  ;;  %v314_v59 = vadd.f32 %v239_v55, %v1748_v11  ;;  %v1419_v60 = vpop.f32.mrb[15].mxu0 }
 0x17a   :  { %v251_v61 = vpack.c.bf16 %v248_v58, %v247_v56  ;;  %v317_v62 = vpack.c.bf16 %v314_v59, %v313_v57 }
 0x17c   :  { %1425 = vmatpush3.bf16.msra.mxu1 %v251_v61 }
 0x17d   :  { %1452 = vmatprep.subr.bf16.mxu1 %v1635_v2 }
 0x17f   :  { %1427 = vmatmul.mubr.msk.bf16.vlgmr.msra.gmra.mrb[4].mxu1 %vm75_vm2, %v1780_v21 }
 0x180   :  { %1430 = vmatprep.mubr.msk.bf16.mxu1 %vm1636_vm0, %v1635_v2  ;;  %1453 = vmatpush3.bf16.msra.mxu1 %v1618_v63 }
 0x181   :  { %1476 = vmatprep.subr.bf16.mxu1 %v1635_v2 }
 0x187   :  { %1431 = vmatmul.mubr.msk.bf16.gmra.mrb[8].mxu1 %vm75_vm2, %v1790_v22 }
 0x188   :  { %1434 = vmatprep.mubr.msk.bf16.mxu1 %vm1636_vm0, %v1635_v2 }
 0x18f   :  { %1435 = vmatmul.mubr.msk.bf16.gmra.mrb[12].mxu1 %vm75_vm2, %v1799_v23 }
 0x190   :  { %1454 = vmatprep.mubr.msk.bf16.mxu1 %vm1636_vm0, %v1635_v2 }
 0x197   :  { %1455 = vmatmul.mubr.msk.bf16.vlgmr.msra.gmra.mrb[16].mxu1 %vm332_vm4, %v315_v42 }
 0x198   :  { %1458 = vmatprep.mubr.msk.bf16.mxu1 %vm1636_vm0, %v1635_v2 }
 0x19f   :  { %1459 = vmatmul.mubr.msk.bf16.gmra.mrb[20].mxu1 %vm332_vm4, %v316_v52 }
 0x1a0   :  { %1462 = vmatprep.mubr.msk.bf16.mxu1 %vm1636_vm0, %v1635_v2 }
 0x1a7   :  { %1463 = vmatmul.mubr.msk.bf16.gmra.mrb[24].mxu1 %vm332_vm4, %v317_v62  ;;  %v1621_v62 = vld [vmem:[%s2054_s4 + $0x18] sm:$0xff]  }
 0x1a8   :  { %1482 = vmatprep.mubr.msk.bf16.mxu1 %vm1636_vm0, %v1635_v2 }
 0x252   :  { %v286_v0 = vpop.f32.mrb[4].mxu1 }
 0x253   :  { %v1428_v1 = vpop.f32.mrb[5].mxu1 }
 0x254   :  { %v289_v3 = vpop.f32.mrb[6].mxu1 }
 0x255   :  { %v320_v4 = vpack.c.bf16 %v289_v3, %v286_v0  ;;  %v1429_v5 = vpop.f32.mrb[7].mxu1 }
 0x257   :  { %1441 = vmatmul.mubr.msk.bf16.vlgmr.msra.gmra.mrb[16].mxu0 %vm332_vm4, %v320_v4 }
 0x258   :  { %1444 = vmatprep.mubr.msk.bf16.mxu0 %vm1636_vm0, %v1635_v2 }
 0x25a   :  { %v294_v6 = vpop.f32.mrb[8].mxu1 }
 0x25b   :  { %v1432_v7 = vpop.f32.mrb[9].mxu1 }
 0x25c   :  { %v297_v8 = vpop.f32.mrb[10].mxu1 }
 0x25d   :  { %v321_v9 = vpack.c.bf16 %v297_v8, %v294_v6  ;;  %v1433_v10 = vpop.f32.mrb[11].mxu1 }
 0x25f   :  { %1445 = vmatmul.mubr.msk.bf16.gmra.mrb[20].mxu0 %vm332_vm4, %v321_v9 }
 0x260   :  { %1448 = vmatprep.mubr.msk.bf16.mxu0 %vm1636_vm0, %v1635_v2 }
 0x262   :  { %v302_v11 = vpop.f32.mrb[12].mxu1 }
 0x263   :  { %v1436_v12 = vpop.f32.mrb[13].mxu1 }
 0x264   :  { %v305_v13 = vpop.f32.mrb[14].mxu1 }
 0x265   :  { %v322_v14 = vpack.c.bf16 %v305_v13, %v302_v11  ;;  %v1437_v15 = vpop.f32.mrb[15].mxu1 }
 0x267   :  { %1449 = vmatmul.mubr.msk.bf16.gmra.mrb[24].mxu0 %vm332_vm4, %v322_v14 }
 0x268   :  { %1472 = vmatprep.mubr.msk.bf16.mxu0 %vm1636_vm0, %v1635_v2 }
 0x26a   :  { %v448_v16 = vpop.f32.mrb[16].mxu1 }
 0x26b   :  { %v1456_v18 = vpop.f32.mrb[17].mxu1 }
 0x26c   :  { %v451_v19 = vpop.f32.mrb[18].mxu1 }
 0x26d   :  { %v1457_v24 = vpop.f32.mrb[19].mxu1 }
 0x272   :  { %v456_v26 = vpop.f32.mrb[20].mxu1 }
 0x273   :  { %v1460_v27 = vpop.f32.mrb[21].mxu1 }
 0x274   :  { %v459_v28 = vpop.f32.mrb[22].mxu1 }
 0x275   :  { %v1461_v29 = vpop.f32.mrb[23].mxu1 }
 0x27a   :  { %v464_v30 = vpop.f32.mrb[24].mxu1 }
 0x27b   :  { %v1464_v31 = vpop.f32.mrb[25].mxu1 }
 0x27c   :  { %v467_v32 = vpop.f32.mrb[26].mxu1 }
 0x27d   :  { %v1465_v33 = vpop.f32.mrb[27].mxu1 }
 0x32a   :  { %v376_v34 = vpop.f32.mrb[16].mxu0 }
 0x32b   :  { %v449_v35 = vadd.f32 %v448_v16, %v376_v34  ;;  %v1442_v36 = vpop.f32.mrb[17].mxu0 }
 0x32c   :  { %v379_v38 = vpop.f32.mrb[18].mxu0 }
 0x32d   :  { %v452_v39 = vadd.f32 %v451_v19, %v379_v38  ;;  %v1443_v40 = vpop.f32.mrb[19].mxu0  ;;  %v1863_v41 = vadd.f32 %v1260_v37, %v449_v35 }
 0x32f   :  { %v1865_v42 = vadd.f32 %v1260_v37, %v452_v39 }
 0x331   :  { %v484_v43 = vpack.c.bf16 %v1865_v42, %v1863_v41 }
 0x332   :  { %v384_v44 = vpop.f32.mrb[20].mxu0 }
 0x333   :  { %v457_v45 = vadd.f32 %v456_v26, %v384_v44  ;;  %v1446_v46 = vpop.f32.mrb[21].mxu0  ;;  %1467 = vmatpush3.bf16.msra.mxu0 %v484_v43  ;;  %1477 = vmatpush3.bf16.msra.mxu1 %v484_v43  ;;  %v1620_v44 = vld [vmem:[%s2054_s4 + $0x10] sm:$0xff]  }
 0x334   :  { %v387_v47 = vpop.f32.mrb[22].mxu0  ;;  %1468 = vmatprep.subr.bf16.mxu0 %v1635_v2  ;;  %1478 = vmatprep.subr.bf16.mxu1 %v1635_v2 }
 0x335   :  { %v460_v48 = vadd.f32 %v459_v28, %v387_v47  ;;  %v1447_v49 = vpop.f32.mrb[23].mxu0  ;;  %v1871_v50 = vadd.f32 %v1260_v37, %v457_v45 }
 0x337   :  { %v1873_v51 = vadd.f32 %v1260_v37, %v460_v48 }
 0x339   :  { %v485_v52 = vpack.c.bf16 %v1873_v51, %v1871_v50 }
 0x33a   :  { %v392_v53 = vpop.f32.mrb[24].mxu0 }
 0x33b   :  { %v465_v54 = vadd.f32 %v464_v30, %v392_v53  ;;  %v1450_v55 = vpop.f32.mrb[25].mxu0  ;;  %1469 = vmatpush3.bf16.msra.mxu0 %v485_v52  ;;  %1479 = vmatpush3.bf16.msra.mxu1 %v485_v52 }
 0x33c   :  { %v395_v56 = vpop.f32.mrb[26].mxu0  ;;  %1470 = vmatprep.subr.bf16.mxu0 %v1635_v2  ;;  %1480 = vmatprep.subr.bf16.mxu1 %v1635_v2 }
 0x33d   :  { %v468_v57 = vadd.f32 %v467_v32, %v395_v56  ;;  %v1451_v58 = vpop.f32.mrb[27].mxu0  ;;  %v1879_v59 = vadd.f32 %v1260_v37, %v465_v54 }
 0x33f   :  { %v1881_v60 = vadd.f32 %v1260_v37, %v468_v57 }
 0x341   :  { %v486_v61 = vpack.c.bf16 %v1881_v60, %v1879_v59 }
 0x343   :  { %1471 = vmatpush3.bf16.msra.mxu0 %v486_v61  ;;  %1481 = vmatpush3.bf16.msra.mxu1 %v486_v61 }
 0x344   :  { %1486 = vmatprep.subr.bf16.mxu0 %v1635_v2  ;;  %1504 = vmatprep.subr.bf16.mxu1 %v1635_v2 }
 0x346   :  { %1473 = vmatmul.mubr.msk.bf16.vlgmr.msra.gmra.mrb[28].mxu0 %vm75_vm2, %v1762_v17  ;;  %1483 = vmatmul.mubr.msk.bf16.vlgmr.msra.gmra.mrb[28].mxu1 %vm75_vm2, %v1769_v20 }
 0x347   :  { %1487 = vmatpush3.bf16.msra.mxu0 %v484_v43  ;;  %1492 = vmatprep.mubr.msk.bf16.mxu0 %vm1636_vm0, %v1635_v2 }
 0x348   :  { %1488 = vmatprep.subr.bf16.mxu0 %v1635_v2  ;;  %1510 = vmatprep.mubr.msk.bf16.mxu1 %vm1636_vm0, %v1635_v2 }
 0x34b   :  { %1489 = vmatpush3.bf16.msra.mxu0 %v485_v52 }
 0x34c   :  { %1490 = vmatprep.subr.bf16.mxu0 %v1635_v2 }
 0x34f   :  { %1491 = vmatpush3.bf16.msra.mxu0 %v486_v61 }
 0x350   :  { %1522 = vmatprep.subr.bf16.mxu0 %v1635_v2 }
 0x352   :  { %1493 = vmatmul.mubr.msk.bf16.vlgmr.msra.gmra.mrb[32].mxu0 %vm75_vm2, %v1780_v21 }
 0x353   :  { %1496 = vmatprep.mubr.msk.bf16.mxu0 %vm1636_vm0, %v1635_v2  ;;  %1523 = vmatpush3.bf16.msra.mxu0 %v1621_v62 }
 0x354   :  { %1550 = vmatprep.subr.bf16.mxu0 %v1635_v2 }
 0x35a   :  { %1497 = vmatmul.mubr.msk.bf16.gmra.mrb[36].mxu0 %vm75_vm2, %v1790_v22 }
 0x35b   :  { %1500 = vmatprep.mubr.msk.bf16.mxu0 %vm1636_vm0, %v1635_v2 }
 0x362   :  { %1501 = vmatmul.mubr.msk.bf16.gmra.mrb[40].mxu0 %vm75_vm2, %v1799_v23 }
 0x363   :  { %1524 = vmatprep.mubr.msk.bf16.mxu0 %vm1636_vm0, %v1635_v2 }
 0x419   :  { %v521_v63 = vpop.f32.mrb[28].mxu0  ;;  %v1914_v0 = vpop.f32.mrb[28].mxu1 }
 0x41a   :  { %950 = vrot.lane.b32.xlu1 %v521_v63, %s1638_s29  ;;  %v1474_v1 = vpop.f32.mrb[29].mxu0  ;;  %v1484_v3 = vpop.f32.mrb[29].mxu1 }
 0x41b   :  { %v524_v4 = vpop.f32.mrb[30].mxu0  ;;  %v564_v5 = vpop.f32.mrb[30].mxu1 }
 0x41c   :  { %v1475_v6 = vpop.f32.mrb[31].mxu0  ;;  %v1485_v7 = vpop.f32.mrb[31].mxu1 }
 0x425   :  { %v601_v8 = vpop.f32.mrb[32].mxu0 }
 0x426   :  { %v1494_v9 = vpop.f32.mrb[33].mxu0  ;;  %v624_v11 = vmul.f32 %v601_v8, %v1863_v41  ;;  %v690_v12 = vadd.f32 %v601_v8, %v1863_v41 }
 0x427   :  { %v604_v10 = vpop.f32.mrb[34].mxu0 }
 0x428   :  { %v625_v13 = vmul.f32 %v604_v10, %v1865_v42  ;;  %v691_v14 = vadd.f32 %v604_v10, %v1865_v42  ;;  %v1495_v15 = vpop.f32.mrb[35].mxu0  ;;  %v1282_v10 = vld [vmem:[%s2055_s5 + $0x1] ss:$0 sm:$0xff] }
 0x42a   :  { %v630_v16 = vpack.c.bf16 %v625_v13, %v624_v11  ;;  %v696_v18 = vpack.c.bf16 %v691_v14, %v690_v12 }
 0x42c   :  { %1505 = vmatpush3.bf16.msra.mxu1 %v630_v16 }
 0x42d   :  { %v609_v19 = vpop.f32.mrb[36].mxu0  ;;  %1506 = vmatprep.subr.bf16.mxu1 %v1635_v2 }
 0x42e   :  { %v1498_v24 = vpop.f32.mrb[37].mxu0  ;;  %v626_v27 = vmul.f32 %v609_v19, %v1871_v50  ;;  %v692_v28 = vadd.f32 %v609_v19, %v1871_v50 }
 0x42f   :  { %v612_v26 = vpop.f32.mrb[38].mxu0 }
 0x430   :  { %v627_v29 = vmul.f32 %v612_v26, %v1873_v51  ;;  %v693_v30 = vadd.f32 %v612_v26, %v1873_v51  ;;  %v1499_v31 = vpop.f32.mrb[39].mxu0 }
 0x432   :  { %v631_v32 = vpack.c.bf16 %v627_v29, %v626_v27  ;;  %v697_v33 = vpack.c.bf16 %v693_v30, %v692_v28 }
 0x434   :  { %1507 = vmatpush3.bf16.msra.mxu1 %v631_v32 }
 0x435   :  { %v617_v34 = vpop.f32.mrb[40].mxu0  ;;  %1508 = vmatprep.subr.bf16.mxu1 %v1635_v2 }
 0x436   :  { %v1502_v35 = vpop.f32.mrb[41].mxu0  ;;  %v628_v37 = vmul.f32 %v617_v34, %v1879_v59  ;;  %v694_v38 = vadd.f32 %v617_v34, %v1879_v59 }
 0x437   :  { %v620_v36 = vpop.f32.mrb[42].mxu0 }
 0x438   :  { %v629_v39 = vmul.f32 %v620_v36, %v1881_v60  ;;  %v695_v40 = vadd.f32 %v620_v36, %v1881_v60  ;;  %v1503_v41 = vpop.f32.mrb[43].mxu0 }
 0x439   :  { %v1622_v41 = vld [vmem:[%s2056_s6] sm:$0xff]  }
 0x43a   :  { %v632_v42 = vpack.c.bf16 %v629_v39, %v628_v37  ;;  %v698_v43 = vpack.c.bf16 %v695_v40, %v694_v38 }
 0x43c   :  { %1509 = vmatpush3.bf16.msra.mxu1 %v632_v42  ;;  %v1623_v42 = vld [vmem:[%s2056_s6 + $0x8] sm:$0xff]  }
 0x43d   :  { %1536 = vmatprep.subr.bf16.mxu1 %v1635_v2 }
 0x43f   :  { %1511 = vmatmul.mubr.msk.bf16.vlgmr.msra.gmra.mrb[32].mxu1 %vm75_vm2, %v1780_v21 }
 0x440   :  { %1514 = vmatprep.mubr.msk.bf16.mxu1 %vm1636_vm0, %v1635_v2  ;;  %1537 = vmatpush3.bf16.msra.mxu1 %v1620_v44  ;;  %v1627_v44 = vld [vmem:[%s2056_s6 + $0x28] sm:$0xff]  }
 0x441   :  { %1560 = vmatprep.subr.bf16.mxu1 %v1635_v2 }
 0x447   :  { %1515 = vmatmul.mubr.msk.bf16.gmra.mrb[36].mxu1 %vm75_vm2, %v1790_v22 }
 0x448   :  { %1518 = vmatprep.mubr.msk.bf16.mxu1 %vm1636_vm0, %v1635_v2 }
 0x44f   :  { %1519 = vmatmul.mubr.msk.bf16.gmra.mrb[40].mxu1 %vm75_vm2, %v1799_v23 }
 0x450   :  { %1538 = vmatprep.mubr.msk.bf16.mxu1 %vm1636_vm0, %v1635_v2 }
 0x457   :  { %1539 = vmatmul.mubr.msk.bf16.vlgmr.msra.gmra.mrb[44].mxu1 %vm332_vm4, %v696_v18 }
 0x458   :  { %1542 = vmatprep.mubr.msk.bf16.mxu1 %vm1636_vm0, %v1635_v2 }
 0x45f   :  { %1543 = vmatmul.mubr.msk.bf16.gmra.mrb[48].mxu1 %vm332_vm4, %v697_v33 }
 0x460   :  { %1546 = vmatprep.mubr.msk.bf16.mxu1 %vm1636_vm0, %v1635_v2 }
 0x467   :  { %1547 = vmatmul.mubr.msk.bf16.gmra.mrb[52].mxu1 %vm332_vm4, %v698_v43  ;;  %v1626_v43 = vld [vmem:[%s2056_s6 + $0x20] sm:$0xff]  }
 0x468   :  { %1566 = vmatprep.mubr.msk.bf16.mxu1 %vm1636_vm0, %v1635_v2 }
 0x512   :  { %v667_v21 = vpop.f32.mrb[32].mxu1 }
 0x513   :  { %v1512_v22 = vpop.f32.mrb[33].mxu1 }
 0x514   :  { %v670_v23 = vpop.f32.mrb[34].mxu1  ;;  %v1629_v22 = vld [vmem:[%s2057_s8 + $0x8] sm:$0xff]  }
 0x515   :  { %v702_v45 = vpack.c.bf16 %v670_v23, %v667_v21  ;;  %v1513_v46 = vpop.f32.mrb[35].mxu1  ;;  %v1628_v21 = vld [vmem:[%s2057_s8] sm:$0xff]  }
 0x517   :  { %1525 = vmatmul.mubr.msk.bf16.vlgmr.msra.gmra.mrb[44].mxu0 %vm332_vm4, %v702_v45 }
 0x518   :  { %1528 = vmatprep.mubr.msk.bf16.mxu0 %vm1636_vm0, %v1635_v2 }
 0x51a   :  { %v675_v47 = vpop.f32.mrb[36].mxu1 }
 0x51b   :  { %v1516_v48 = vpop.f32.mrb[37].mxu1 }
 0x51c   :  { %v678_v49 = vpop.f32.mrb[38].mxu1 }
 0x51d   :  { %v703_v50 = vpack.c.bf16 %v678_v49, %v675_v47  ;;  %v1517_v51 = vpop.f32.mrb[39].mxu1 }
 0x51f   :  { %1529 = vmatmul.mubr.msk.bf16.gmra.mrb[48].mxu0 %vm332_vm4, %v703_v50 }
 0x520   :  { %1532 = vmatprep.mubr.msk.bf16.mxu0 %vm1636_vm0, %v1635_v2 }
 0x522   :  { %v683_v52 = vpop.f32.mrb[40].mxu1 }
 0x523   :  { %v1520_v53 = vpop.f32.mrb[41].mxu1 }
 0x524   :  { %v686_v54 = vpop.f32.mrb[42].mxu1 }
 0x525   :  { %v704_v55 = vpack.c.bf16 %v686_v54, %v683_v52  ;;  %v1521_v56 = vpop.f32.mrb[43].mxu1  ;;  %v951_v52 = vpop.permute.xlu1 %950 }
 0x526   :  { %v969_v53 = vsel %vm332_vm4, %v1809_v25, %v951_v52  ;;  %v1630_v25 = vld [vmem:[%s2057_s8 + $0x10] sm:$0xff]  }
 0x527   :  { %1533 = vmatmul.mubr.msk.bf16.gmra.mrb[52].mxu0 %vm332_vm4, %v704_v55  ;;  %v959_v55 = vpop.permute.xlu0 %958 }
 0x528   :  { %1556 = vmatprep.mubr.msk.bf16.mxu0 %vm1636_vm0, %v1635_v2 }
 0x52a   :  { %v829_v57 = vpop.f32.mrb[44].mxu1 }
 0x52b   :  { %v1540_v58 = vpop.f32.mrb[45].mxu1 }
 0x52c   :  { %v832_v59 = vpop.f32.mrb[46].mxu1 }
 0x52d   :  { %v1541_v60 = vpop.f32.mrb[47].mxu1 }
 0x532   :  { %v837_v61 = vpop.f32.mrb[48].mxu1 }
 0x533   :  { %v1544_v62 = vpop.f32.mrb[49].mxu1 }
 0x534   :  { %v840_v63 = vpop.f32.mrb[50].mxu1  ;;  %v1631_v62 = vld [vmem:[%s2057_s8 + $0x18] sm:$0xff]  }
 0x535   :  { %v1545_v1 = vpop.f32.mrb[51].mxu1 }
 0x53a   :  { %v845_v3 = vpop.f32.mrb[52].mxu1 }
 0x53b   :  { %v1548_v4 = vpop.f32.mrb[53].mxu1 }
 0x53c   :  { %v848_v5 = vpop.f32.mrb[54].mxu1 }
 0x53d   :  { %v1549_v6 = vpop.f32.mrb[55].mxu1 }
 0x5ea   :  { %v757_v7 = vpop.f32.mrb[44].mxu0 }
 0x5eb   :  { %v830_v8 = vadd.f32 %v829_v57, %v757_v7  ;;  %v1526_v9 = vpop.f32.mrb[45].mxu0 }
 0x5ec   :  { %v760_v11 = vpop.f32.mrb[46].mxu0 }
 0x5ed   :  { %v833_v12 = vadd.f32 %v832_v59, %v760_v11  ;;  %v1527_v13 = vpop.f32.mrb[47].mxu0  ;;  %v860_v14 = vadd.f32 %v1282_v10, %v830_v8  ;;  %v1633_v11 = vld [vmem:[%s2059_s10 + $0x8] sm:$0xff]  }
 0x5ee   :  { %v1293_v13 = vld [vmem:[%s2061_s9] ss:$0 sm:$0xff] }
 0x5ef   :  { %v861_v15 = vadd.f32 %v1282_v10, %v833_v12  ;;  %v17_v12 = vstv %s2060_s11 }
 0x5f0   :  { %18 = vst [vmem:[#allocation2] sm:$0x1] %v17_v12 }
 0x5f1   :  { %v866_v16 = vpack.c.bf16 %v861_v15, %v860_v14 }
 0x5f2   :  { %v765_v18 = vpop.f32.mrb[48].mxu0 }
 0x5f3   :  { %v838_v19 = vadd.f32 %v837_v61, %v765_v18  ;;  %v1530_v24 = vpop.f32.mrb[49].mxu0  ;;  %1551 = vmatpush3.bf16.msra.mxu0 %v866_v16  ;;  %1561 = vmatpush3.bf16.msra.mxu1 %v866_v16 }
 0x5f4   :  { %v768_v26 = vpop.f32.mrb[50].mxu0  ;;  %1552 = vmatprep.subr.bf16.mxu0 %v1635_v2  ;;  %1562 = vmatprep.subr.bf16.mxu1 %v1635_v2 }
 0x5f5   :  { %v841_v27 = vadd.f32 %v840_v63, %v768_v26  ;;  %v1531_v28 = vpop.f32.mrb[51].mxu0  ;;  %v862_v29 = vadd.f32 %v1282_v10, %v838_v19  ;;  %v1285_v63 = vld [vmem:[%s2058_s7] ss:$0 sm:$0xff] }
 0x5f7   :  { %v863_v30 = vadd.f32 %v1282_v10, %v841_v27  ;;  %v1299_v27 = vld [vmem:[#allocation2] ss:$0 sm:$0xff] }
 0x5f9   :  { %v867_v31 = vpack.c.bf16 %v863_v30, %v862_v29 }
 0x5fa   :  { %v773_v32 = vpop.f32.mrb[52].mxu0 }
 0x5fb   :  { %v846_v33 = vadd.f32 %v845_v3, %v773_v32  ;;  %v1534_v34 = vpop.f32.mrb[53].mxu0  ;;  %1553 = vmatpush3.bf16.msra.mxu0 %v867_v31  ;;  %1563 = vmatpush3.bf16.msra.mxu1 %v867_v31 }
 0x5fc   :  { %v776_v35 = vpop.f32.mrb[54].mxu0  ;;  %1554 = vmatprep.subr.bf16.mxu0 %v1635_v2  ;;  %1564 = vmatprep.subr.bf16.mxu1 %v1635_v2 }
 0x5fd   :  { %v849_v36 = vadd.f32 %v848_v5, %v776_v35  ;;  %v1535_v37 = vpop.f32.mrb[55].mxu0  ;;  %v864_v38 = vadd.f32 %v1282_v10, %v846_v33 }
 0x5ff   :  { %v865_v39 = vadd.f32 %v1282_v10, %v849_v36  ;;  %v1632_v10 = vld [vmem:[%s2059_s10] sm:$0xff]  }
 0x601   :  { %v868_v40 = vpack.c.bf16 %v865_v39, %v864_v38 }
 0x603   :  { %1555 = vmatpush3.bf16.msra.mxu0 %v868_v40  ;;  %1565 = vmatpush3.bf16.msra.mxu1 %v868_v40 }
 0x604   :  { %1570 = vmatprep.subr.bf16.mxu0 %v1635_v2  ;;  %1586 = vmatprep.subr.bf16.mxu1 %v1635_v2 }
 0x606   :  { %1557 = vmatmul.mubr.msk.bf16.vlgmr.msra.gmra.mrb[56].mxu0 %vm75_vm2, %v1762_v17  ;;  %1567 = vmatmul.mubr.msk.bf16.vlgmr.msra.gmra.mrb[56].mxu1 %vm75_vm2, %v1769_v20  ;;  %v1624_v17 = vld [vmem:[%s2056_s6 + $0x10] sm:$0xff]   ;;  %v1625_v20 = vld [vmem:[%s2056_s6 + $0x18] sm:$0xff]   ;;  %s1641_s6 = smov 64  }
 0x607   :  { %1582 = vmatprep.mubr.msk.bf16.mxu0 %vm1636_vm0, %v1635_v2  ;;  %1594 = vmatprep.mubr.msk.bf16.mxu1 %vm1636_vm0, %v1635_v2 }
 0x608   :  { %1571 = vmatpush3.bf16.msra.mxu0 %v1622_v41  ;;  %1587 = vmatpush3.bf16.msra.mxu1 %v1628_v21 }
 0x609   :  { %1572 = vmatprep.subr.bf16.mxu0 %v1635_v2  ;;  %1588 = vmatprep.subr.bf16.mxu1 %v1635_v2 }
 0x60c   :  { %1573 = vmatpush3.bf16.msra.mxu0 %v1623_v42  ;;  %1589 = vmatpush3.bf16.msra.mxu1 %v1629_v22 }
 0x60d   :  { %1574 = vmatprep.subr.bf16.mxu0 %v1635_v2  ;;  %1590 = vmatprep.subr.bf16.mxu1 %v1635_v2 }
 0x610   :  { %1575 = vmatpush3.bf16.msra.mxu0 %v1624_v17  ;;  %1591 = vmatpush3.bf16.msra.mxu1 %v1630_v25 }
 0x611   :  { %1576 = vmatprep.subr.bf16.mxu0 %v1635_v2  ;;  %1592 = vmatprep.subr.bf16.mxu1 %v1635_v2 }
 0x614   :  { %1577 = vmatpush3.bf16.msra.mxu0 %v1625_v20  ;;  %1593 = vmatpush3.bf16.msra.mxu1 %v1631_v62 }
 0x615   :  { %1578 = vmatprep.subr.bf16.mxu0 %v1635_v2  ;;  %1598 = vmatprep.subr.bf16.mxu1 %v1635_v2 }
 0x618   :  { %1579 = vmatpush3.bf16.msra.mxu0 %v1626_v43 }
 0x619   :  { %1580 = vmatprep.subr.bf16.mxu0 %v1635_v2 }
 0x61c   :  { %1581 = vmatpush3.bf16.msra.mxu0 %v1627_v44 }
 0x6d9   :  { %v903_v23 = vpop.f32.mrb[56].mxu0  ;;  %v943_v45 = vpop.f32.mrb[56].mxu1 }
 0x6da   :  { %954 = vrot.lane.b32.xlu1 %v903_v23, %s1639_s27  ;;  %v1558_v46 = vpop.f32.mrb[57].mxu0  ;;  %966 = vrot.lane.b32.xlu0 %v943_v45, %s1640_s28  ;;  %v1568_v47 = vpop.f32.mrb[57].mxu1 }
 0x6db   :  { %v906_v48 = vpop.f32.mrb[58].mxu0  ;;  %v946_v49 = vpop.f32.mrb[58].mxu1 }
 0x6dc   :  { %v1559_v50 = vpop.f32.mrb[59].mxu0  ;;  %v1569_v51 = vpop.f32.mrb[59].mxu1 }
 0x6de   :  { %962 = vrot.lane.b32.xlu1 %v1914_v0, %s1641_s6 }
 0x74c   :  { %v955_v54 = vpop.permute.xlu1 %954  ;;  %v967_v59 = vpop.permute.xlu0 %966 }
 0x74d   :  { %v971_v56 = vsel %vm970_vm5, %v969_v53, %v955_v54 }
 0x74e   :  { %v972_v57 = vsel %vm75_vm2, %v971_v56, %v959_v55 }
 0x750   :  { %v963_v58 = vpop.permute.xlu1 %962 }
 0x751   :  { %v974_v60 = vsel %vm973_vm6, %v972_v57, %v963_v58 }
 0x752   :  { %v976_v61 = vsel %vm975_vm7, %v974_v60, %v967_v59 }
 0x753   :  { %v977_v0 = vpack.c.bf16 %v976_v61, %v976_v61 }
 0x755   :  { %1583 = vmatmul.mubr.msk.bf16.vlgmr.msra.gmra.mrb[60].mxu0 %vm1033_vm8, %v977_v0 }
 0x828   :  { %v1071_v1 = vpop.f32.mrb[60].mxu0 }
 0x829   :  { %v1072_v3 = vadd.f32 %v1285_v63, %v1071_v1  ;;  %v1584_v4 = vpop.f32.mrb[61].mxu0 }
 0x82a   :  { %v1074_v5 = vpop.f32.mrb[62].mxu0 }
 0x82b   :  { %vm1077_vm9 = vcmp.gt.f32.partialorder %v1072_v3, 0.0  ;;  %v1078_v6 = vmul.f32 0.01, %v1072_v3  ;;  %v1585_v7 = vpop.f32.mrb[63].mxu0 }
 0x82d   :  { %v1079_v8 = vsel %vm1077_vm9, %v1072_v3, %v1078_v6 }
 0x82e   :  { %v1080_v9 = vpack.c.bf16 %v1079_v8, %v1079_v8 }
 0x830   :  { %1595 = vmatmul.mubr.msk.bf16.vlgmr.msra.gmra.mrb[60].mxu1 %vm973_vm6, %v1080_v9 }
 0x831   :  { %1602 = vmatprep.mubr.msk.bf16.mxu1 %vm1636_vm0, %v1635_v2  ;;  %1599 = vmatpush3.bf16.msra.mxu1 %v1632_v10 }
 0x832   :  { %1600 = vmatprep.subr.bf16.mxu1 %v1635_v2 }
 0x835   :  { %1601 = vmatpush3.bf16.msra.mxu1 %v1633_v11 }
 0x903   :  { %v1157_v14 = vpop.f32.mrb[60].mxu1 }
 0x904   :  { %v1158_v15 = vadd.f32 %v1293_v13, %v1157_v14  ;;  %v1596_v16 = vpop.f32.mrb[61].mxu1 }
 0x905   :  { %v1160_v18 = vpop.f32.mrb[62].mxu1 }
 0x906   :  { %vm1163_vm10 = vcmp.gt.f32.partialorder %v1158_v15, 0.0  ;;  %v1164_v2 = vmul.f32 0.01, %v1158_v15  ;;  %v1597_v19 = vpop.f32.mrb[63].mxu1 }
 0x908   :  { %v1165_v24 = vsel %vm1163_vm10, %v1158_v15, %v1164_v2 }
 0x909   :  { %v1166_v26 = vpack.c.bf16 %v1165_v24, %v1165_v24 }
 0x90b   :  { %1603 = vmatmul.mubr.msk.bf16.vlgmr.msra.gmra.mrb[64].mxu1 %vm970_vm5, %v1166_v26 }
 0x9de   :  { %v1227_v28 = vpop.f32.mrb[64].mxu1 }
 0x9df   :  { %v1228_v29 = vadd.f32 %v1299_v27, %v1227_v28  ;;  %v1604_v30 = vpop.f32.mrb[65].mxu1 }
 0x9e0   :  { %v1230_v31 = vpop.f32.mrb[66].mxu1 }
 0x9e1   :  { %1234 = vst.msk [vmem:[%s2062_s12] sm:$0xf] %vm1233_vm11, %v1228_v29  ;;  %v1605_v32 = vpop.f32.mrb[67].mxu1 }

</bundles_post_ra>
